<compile_context>
chip_gen: v7x
topology: tpu7x:2x2x1
jax: 0.10.0
libtpu: 0.0.40
codegen_flags: <defaults>
</compile_context>

<pallas_src>
import jax
import jax.numpy as jnp
from jax import lax
from jax.experimental import pallas as pl
from jax.experimental.pallas import tpu as pltpu


NUM_FIELDS = 6  # top_left_x, top_left_y, bottom_right_x, bottom_right_y, w, h


def spatial_kernel(coords_ref, tables_ref, out_ref):
    # coords_ref : [TM, 6]     int32    (one row-tile of flattened (B*S) tokens)
    # tables_ref : [6*V, D]    f32/bf16 (all six tables stacked along axis 0)
    # out_ref    : [TM, D]     f32/bf16
    tm = coords_ref.shape[0]
    kv, _ = tables_ref.shape
    v = kv // NUM_FIELDS
    tab_dtype = tables_ref.dtype

    # Load the whole coordinate tile once; per-field columns are static slices.
    coords = coords_ref[...]                               # [TM, 6] int32

    # Lane-major iota over a single-field vocabulary axis (reused for all k).
    col_v = lax.broadcasted_iota(jnp.int32, (tm, v), 1)    # [TM, V]

    # Per-field one-hots -> concat along lanes into the fused [TM, 6V]
    # selector.  Segments are disjoint, so concatenation == the multi-hot sum.
    hots = []
    for k in range(NUM_FIELDS):
        idx_col = coords[:, k:k + 1]                       # [TM, 1], broadcasts
        hots.append((col_v == idx_col).astype(tab_dtype))  # [TM, V] (VPU)
    hot = jnp.concatenate(hots, axis=-1)                   # [TM, 6V]

    # Single fused MXU matmul with f32 accumulation:
    #   [TM, 6V] @ [6V, D] -> [TM, D]
    out_ref[...] = jnp.dot(
        hot,
        tables_ref[...],
        preferred_element_type=jnp.float32,
    ).astype(out_ref.dtype)


def spatial_module_forward(coordinates, tables, *, tm=256, out_dtype=None):
    """LaTr SpatialModule forward.

    coordinates: [B, S, 6] integer box coordinates in [0, V)
    tables:      [6, V, D] embedding tables stacked in field order
                 (f32, or bf16 for the fast MXU path)
    returns:     [B, S, D]
    """
    B, S, K = coordinates.shape
    assert K == NUM_FIELDS
    nf, V, D = tables.shape
    assert nf == NUM_FIELDS
    if out_dtype is None:
        out_dtype = tables.dtype

    # Flatten (B, S) -> rows; adapt the row tile down for tiny inputs
    # (keep it a multiple of 8 sublanes), then pad rows to a tile multiple.
    rows = B * S
    rows_8 = pl.cdiv(rows, 8) * 8
    tm = max(8, min(tm, rows_8))
    rows_padded = pl.cdiv(rows, tm) * tm

    coords_flat = coordinates.reshape(rows, NUM_FIELDS).astype(jnp.int32)
    if rows_padded != rows:
        coords_flat = jnp.pad(coords_flat, ((0, rows_padded - rows), (0, 0)))

    # Stack the six tables along the vocabulary axis -> one [6*V, D] slab.
    tables_flat = tables.reshape(NUM_FIELDS * V, D)

    out = pl.pallas_call(
        spatial_kernel,
        out_shape=jax.ShapeDtypeStruct((rows_padded, D), out_dtype),
        grid_spec=pltpu.PrefetchScalarGridSpec(
            num_scalar_prefetch=0,
            grid=(rows_padded // tm,),
            in_specs=[
                # Row tile of coordinates (last dim == full dim 6).
                pl.BlockSpec((tm, NUM_FIELDS), lambda r: (r, 0)),
                # Grid-invariant stacked tables: constant index_map -> fetched
                # once, resident across all row tiles.
                pl.BlockSpec((NUM_FIELDS * V, D), lambda r: (0, 0)),
            ],
            out_specs=pl.BlockSpec((tm, D), lambda r: (r, 0)),
        ),
        compiler_params=pltpu.CompilerParams(
            dimension_semantics=("parallel",),
            vmem_limit_bytes=48 * 1024 * 1024,
        ),
    )(coords_flat, tables_flat)

    return out[:rows].reshape(B, S, D)


if __name__ == "__main__":
    # Small config consistent with the module (lane-friendly test sizes).
    B = 2        # batch
    S = 16       # sequence length (number of boxes/tokens)
    V = 128      # config.max_2d_position_embeddings (small test value)
    D = 128      # config.d_model (small test value)

    key = jax.random.PRNGKey(0)
    k_tab, k_coord = jax.random.split(key)

    # Deterministic synthetic embedding tables, stacked in field order.
    tables = jax.random.normal(k_tab, (NUM_FIELDS, V, D), dtype=jnp.float32) * 0.02

    # Integer coordinates in [0, V).
    coordinates = jax.random.randint(
        k_coord, (B, S, NUM_FIELDS), minval=0, maxval=V, dtype=jnp.int32
    )

    out = spatial_module_forward(coordinates, tables)
    out = jax.block_until_ready(out)

    # Pure-JAX reference (embedding lookup + sum).
    ref = jnp.zeros((B, S, D), jnp.float32)
    for k in range(NUM_FIELDS):
        ref = ref + jnp.take(tables[k], coordinates[:, :, k], axis=0)

    assert out.shape == (B, S, D)
    assert jnp.allclose(out, ref, atol=1e-5, rtol=1e-5), "mismatch vs reference"

    print("KERNEL_OK")
</pallas_src>

<mosaic_0001>
module attributes {stable_mosaic.version = 11 : i64} {
  func.func @spatial_kernel(%arg0: i32, %arg1: memref<32x6xi32, #tpu.memory_space<vmem>>, %arg2: memref<768x128xf32, #tpu.memory_space<vmem>>, %arg3: memref<32x128xf32, #tpu.memory_space<vmem>>) attributes {dimension_semantics = [#tpu.dimension_semantics<parallel>], iteration_bounds = array<i64: 1>, scalar_prefetch = 0 : i64, scratch_operands = 0 : i64, tpu.core_type = #tpu.core_type<tc>, window_params = [{transform_indices = @transform_0, window_bounds = array<i64: 32, 6>}, {pipeline_mode = #tpu.pipeline_mode<synchronous>, transform_indices = @transform_1, window_bounds = array<i64: 768, 128>}, {transform_indices = @transform_2, window_bounds = array<i64: 32, 128>}]} {
    %c0 = arith.constant 0 : index
    %c0_0 = arith.constant 0 : index
    %0 = vector.load %arg1[%c0, %c0_0] : memref<32x6xi32, #tpu.memory_space<vmem>>, vector<32x6xi32>
    %1 = tpu.iota {dimensions = array<i32: 1>} : vector<32x128xi32>
    %2 = vector.extract_strided_slice %0 {offsets = [0, 0], sizes = [32, 1], strides = [1, 1]} : vector<32x6xi32> to vector<32x1xi32>
    %3 = vector.broadcast %2 : vector<32x1xi32> to vector<32x128xi32>
    %4 = arith.cmpi eq, %1, %3 : vector<32x128xi32>
    %5 = arith.extui %4 : vector<32x128xi1> to vector<32x128xi32>
    %6 = arith.sitofp %5 : vector<32x128xi32> to vector<32x128xf32>
    %7 = vector.extract_strided_slice %0 {offsets = [0, 1], sizes = [32, 1], strides = [1, 1]} : vector<32x6xi32> to vector<32x1xi32>
    %8 = vector.broadcast %7 : vector<32x1xi32> to vector<32x128xi32>
    %9 = arith.cmpi eq, %1, %8 : vector<32x128xi32>
    %10 = arith.extui %9 : vector<32x128xi1> to vector<32x128xi32>
    %11 = arith.sitofp %10 : vector<32x128xi32> to vector<32x128xf32>
    %12 = vector.extract_strided_slice %0 {offsets = [0, 2], sizes = [32, 1], strides = [1, 1]} : vector<32x6xi32> to vector<32x1xi32>
    %13 = vector.broadcast %12 : vector<32x1xi32> to vector<32x128xi32>
    %14 = arith.cmpi eq, %1, %13 : vector<32x128xi32>
    %15 = arith.extui %14 : vector<32x128xi1> to vector<32x128xi32>
    %16 = arith.sitofp %15 : vector<32x128xi32> to vector<32x128xf32>
    %17 = vector.extract_strided_slice %0 {offsets = [0, 3], sizes = [32, 1], strides = [1, 1]} : vector<32x6xi32> to vector<32x1xi32>
    %18 = vector.broadcast %17 : vector<32x1xi32> to vector<32x128xi32>
    %19 = arith.cmpi eq, %1, %18 : vector<32x128xi32>
    %20 = arith.extui %19 : vector<32x128xi1> to vector<32x128xi32>
    %21 = arith.sitofp %20 : vector<32x128xi32> to vector<32x128xf32>
    %22 = vector.extract_strided_slice %0 {offsets = [0, 4], sizes = [32, 1], strides = [1, 1]} : vector<32x6xi32> to vector<32x1xi32>
    %23 = vector.broadcast %22 : vector<32x1xi32> to vector<32x128xi32>
    %24 = arith.cmpi eq, %1, %23 : vector<32x128xi32>
    %25 = arith.extui %24 : vector<32x128xi1> to vector<32x128xi32>
    %26 = arith.sitofp %25 : vector<32x128xi32> to vector<32x128xf32>
    %27 = vector.extract_strided_slice %0 {offsets = [0, 5], sizes = [32, 1], strides = [1, 1]} : vector<32x6xi32> to vector<32x1xi32>
    %28 = vector.broadcast %27 : vector<32x1xi32> to vector<32x128xi32>
    %29 = arith.cmpi eq, %1, %28 : vector<32x128xi32>
    %30 = arith.extui %29 : vector<32x128xi1> to vector<32x128xi32>
    %31 = arith.sitofp %30 : vector<32x128xi32> to vector<32x128xf32>
    %32 = tpu.concatenate %6, %11, %16, %21, %26, %31 in 1 : vector<32x128xf32>, vector<32x128xf32>, vector<32x128xf32>, vector<32x128xf32>, vector<32x128xf32>, vector<32x128xf32> -> vector<32x768xf32>
    %c0_1 = arith.constant 0 : index
    %c0_2 = arith.constant 0 : index
    %33 = vector.load %arg2[%c0_1, %c0_2] : memref<768x128xf32, #tpu.memory_space<vmem>>, vector<768x128xf32>
    %cst = arith.constant dense<0.000000e+00> : vector<32x128xf32>
    %34 = tpu.matmul %32, %33, %cst {dimension_numbers = #tpu.dot_dimension_numbers<[1], [0], [0], [1], [0, 0, 1, 1], [], []>} : vector<32x768xf32>, vector<768x128xf32>, vector<32x128xf32> -> vector<32x128xf32>
    %c0_3 = arith.constant 0 : index
    %c0_4 = arith.constant 0 : index
    %35 = vector.load %arg3[%c0_3, %c0_4] : memref<32x128xf32, #tpu.memory_space<vmem>>, vector<32x128xf32>
    tpu.vector_store %arg3[%c0_3, %c0_4], %34 {strides = array<i32>} : memref<32x128xf32, #tpu.memory_space<vmem>>, vector<32x128xf32>,
    return
  }
  func.func @transform_0(%arg0: i32) -> (i32, i32) {
    %c0_i32 = arith.constant 0 : i32
    %c0_i32_0 = arith.constant 0 : i32
    return %arg0, %c0_i32 : i32, i32
  }
  func.func @transform_1(%arg0: i32) -> (i32, i32) {
    %c0_i32 = arith.constant 0 : i32
    %c0_i32_0 = arith.constant 0 : i32
    %c0_i32_1 = arith.constant 0 : i32
    return %c0_i32, %c0_i32_0 : i32, i32
  }
  func.func @transform_2(%arg0: i32) -> (i32, i32) {
    %c0_i32 = arith.constant 0 : i32
    %c0_i32_0 = arith.constant 0 : i32
    return %arg0, %c0_i32 : i32, i32
  }
}

</mosaic_0001>

<bundles_post_ra>
// kernel: tpu_custom_call.1
= control target key start
LH: loop header
LB: loop body
LE: loop exit
PB: predicated region body
PF: predicated region fallthrough
CT: control target
= control target key end

     0   :  { %7 = vsyncpa [#allocation3], 0  ;;  %s1086_s0 = inlined_call_operand.vmem [shape: s32[32,6], index: 0, kind: input, shape index: {}]   ;;  %s1087_s1 = inlined_call_operand.hbm [shape: f32[768,128], index: 1, kind: input, shape index: {}]   ;;  %s1088_s2 = inlined_call_operand.hbm [shape: f32[32,128], index: 2, kind: output, shape index: {}]  }
   0x1   :  { %8 = vsyncpa [#allocation4], 0  ;;  %s921_s9 = smov [#allocation2]   ;;  %s873_s13 = scalar_lea.hbm %s1087_s1, 12288 }
   0x2   :  { %s16_s10 = sshll.u32 %s921_s9, 4  ;;  %p874_p0 = scmp.ne.s32.totalorder %s1087_s1, %s873_s13  ;;  %s17_s10 = int_to_ptr.vmem [resolvable:$true] %s16_s10 }
   0x3   :  { %p877_p1 = scmp.lt.u32.totalorder %s873_s13, %s1087_s1 }
   0x5   :  { %p879_p2 = pnand %p877_p1, %p874_p0 }
   0x7   :  { %882 = shalt.err (!%p879_p2)
}
   0x8   :  { %s883_s18 = scalar_lea.vmem %s17_s10, 12288  ;;  %p888_p4 = scmp.lt.s32.totalorder %s17_s10, %s17_s10 }
   0x9   :  { %p884_p3 = scmp.ne.s32.totalorder %s17_s10, %s883_s18  ;;  %p889_p5 = scmp.lt.s32.totalorder %s883_s18, %s883_s18 }
   0xb   :  { %p890_p6 = por %p889_p5, %p888_p4 }
   0xd   :  { %p891_p7 = pnand %p890_p6, %p884_p3 }
   0xf   :  { %894 = shalt.err (!%p891_p7)
}
  0x10   :  { %s922_s19 = smov 128   ;;  %s923_s20 = smov 8  }
  0x11   :  { %22 = dma.hbm_to_vmem [thread:$0]  %s1087_s1, 12288, %s17_s10, [#allocation3], %s922_s19, %s922_s19, %s923_s20  }
  0x12   :  { %917 = dma.done.wait [#allocation3], 12288  }
  0x13   :  { %918 = vsyncadd [#allocation3], 4294955008  ;;  %v924_v0 = vmov 1   ;;  %v925_v1 = vmov 0   ;;  %v967_v2 = vld [vmem:[%s1086_s0] sm:$0xff]  ;;  %v193_v4 = vld [vmem:[#allocation2 + $0x88] sm:$0xff] }
  0x14   :  { %851 = vset.pattern.permute.xlu0 %v924_v0  ;;  %853 = vset.pattern.permute.xlu1 %v925_v1  ;;  %v192_v3 = vld [vmem:[#allocation2 + $0x80] sm:$0xff]  ;;  %v177_v7 = vld [vmem:[#allocation2 + $0x8] sm:$0xff]  ;;  %v194_v8 = vld [vmem:[#allocation2 + $0x90] sm:$0xff]  ;;  %v926_v15 = vmov 2   ;;  %v927_v16 = vmov 3  }
  0x15   :  { %33 = vperm.xlu1 %853, %v967_v2   ;;  %57 = vperm.xlu0 %851, %v967_v2   ;;  %v728_v5 = vpack.c.bf16 %v193_v4, %v192_v3  ;;  %v176_v6 = vld [vmem:[#allocation2] sm:$0xff]  ;;  %v195_v10 = vld [vmem:[#allocation2 + $0x98] sm:$0xff]  ;;  %v225_v13 = vld [vmem:[#allocation2 + $0x188] sm:$0xff] }
  0x16   :  { %v730_v9 = vpack.c.bf16 %v177_v7, %v176_v6  ;;  %v732_v11 = vpack.c.bf16 %v195_v10, %v194_v8  ;;  %v224_v12 = vld [vmem:[#allocation2 + $0x180] sm:$0xff]  ;;  %v178_v17 = vld [vmem:[#allocation2 + $0x10] sm:$0xff]  ;;  %v179_v18 = vld [vmem:[#allocation2 + $0x18] sm:$0xff] }
  0x17   :  { %729 = vmatprep.subr.bf16.mxu0 %v728_v5  ;;  %v208_v14 = vld [vmem:[#allocation2 + $0x100] sm:$0xff]  ;;  %v760_v19 = vpack.c.bf16 %v225_v13, %v224_v12  ;;  %v209_v20 = vld [vmem:[#allocation2 + $0x108] sm:$0xff]  ;;  %v226_v24 = vld [vmem:[#allocation2 + $0x190] sm:$0xff]  ;;  %v734_v29 = vpack.c.bf16 %v179_v18, %v178_v17 }
  0x18   :  { %v762_v21 = vpack.c.bf16 %v209_v20, %v208_v14  ;;  %v196_v22 = vld [vmem:[#allocation2 + $0xa0] sm:$0xff]  ;;  %v197_v23 = vld [vmem:[#allocation2 + $0xa8] sm:$0xff]  ;;  %731 = vmatpush3.bf16.msra.mxu0 %v730_v9  ;;  %v227_v25 = vld [vmem:[#allocation2 + $0x198] sm:$0xff] }
  0x19   :  { %854 = vset.pattern.permute.xlu1 %v926_v15  ;;  %852 = vset.pattern.permute.xlu0 %v927_v16  ;;  %v210_v26 = vld [vmem:[#allocation2 + $0x110] sm:$0xff]  ;;  %v211_v27 = vld [vmem:[#allocation2 + $0x118] sm:$0xff]  ;;  %v978_v28 = vld [vmem:[%s1086_s0 + $0x8] sm:$0xff]  ;;  %v764_v30 = vpack.c.bf16 %v227_v25, %v226_v24  ;;  %v736_v31 = vpack.c.bf16 %v197_v23, %v196_v22 }
  0x1a   :  { %81 = vperm.xlu1 %854, %v967_v2   ;;  %105 = vperm.xlu0 %852, %v967_v2   ;;  %v180_v32 = vld [vmem:[#allocation2 + $0x20] sm:$0xff]  ;;  %v766_v33 = vpack.c.bf16 %v211_v27, %v210_v26  ;;  %v229_v35 = vld [vmem:[#allocation2 + $0x1a8] sm:$0xff]  ;;  %v198_v40 = vld [vmem:[#allocation2 + $0xb0] sm:$0xff]  ;;  %v928_v26 = vmov 5  }
  0x1b   :  { %761 = vmatprep.subr.bf16.mxu1 %v760_v19  ;;  %733 = vmatprep.subr.bf16.mxu0 %v732_v11  ;;  %v228_v34 = vld [vmem:[#allocation2 + $0x1a0] sm:$0xff]  ;;  %v181_v36 = vld [vmem:[#allocation2 + $0x28] sm:$0xff]  ;;  %v199_v41 = vld [vmem:[#allocation2 + $0xb8] sm:$0xff] }
  0x1c   :  { %763 = vmatpush3.bf16.msra.mxu1 %v762_v21  ;;  %v768_v37 = vpack.c.bf16 %v229_v35, %v228_v34  ;;  %v212_v38 = vld [vmem:[#allocation2 + $0x120] sm:$0xff]  ;;  %v213_v39 = vld [vmem:[#allocation2 + $0x128] sm:$0xff]  ;;  %735 = vmatpush3.bf16.msra.mxu0 %v734_v29  ;;  %v230_v42 = vld [vmem:[#allocation2 + $0x1b0] sm:$0xff]  ;;  %v738_v45 = vpack.c.bf16 %v181_v36, %v180_v32  ;;  %v740_v47 = vpack.c.bf16 %v199_v41, %v198_v40  ;;  %v929_v41 = vmov 4  }
  0x1d   :  { %765 = vmatprep.subr.bf16.mxu1 %v764_v30  ;;  %v231_v43 = vld [vmem:[#allocation2 + $0x1b8] sm:$0xff]  ;;  %v987_v44 = vld [vmem:[%s1086_s0 + $0x10] sm:$0xff]  ;;  %737 = vmatprep.subr.bf16.mxu0 %v736_v31  ;;  %v770_v46 = vpack.c.bf16 %v213_v39, %v212_v38  ;;  %v200_v51 = vld [vmem:[#allocation2 + $0xc0] sm:$0xff] }
  0x1e   :  { %855 = vset.pattern.permute.xlu1 %v924_v0  ;;  %857 = vset.pattern.permute.xlu0 %v926_v15  ;;  %v182_v48 = vld [vmem:[#allocation2 + $0x30] sm:$0xff]  ;;  %v183_v49 = vld [vmem:[#allocation2 + $0x38] sm:$0xff]  ;;  %v772_v50 = vpack.c.bf16 %v231_v43, %v230_v42  ;;  %v201_v54 = vld [vmem:[#allocation2 + $0xc8] sm:$0xff] }
  0x1f   :  { %60 = vperm.xlu1 %855, %v978_v28   ;;  %84 = vperm.xlu0 %857, %v978_v28   ;;  %v214_v52 = vld [vmem:[#allocation2 + $0x130] sm:$0xff]  ;;  %v215_v53 = vld [vmem:[#allocation2 + $0x138] sm:$0xff]  ;;  %v232_v55 = vld [vmem:[#allocation2 + $0x1c0] sm:$0xff]  ;;  %v742_v57 = vpack.c.bf16 %v183_v49, %v182_v48  ;;  %v744_v59 = vpack.c.bf16 %v201_v54, %v200_v51 }
  0x20   :  { %767 = vmatpush3.bf16.msra.mxu1 %v766_v33  ;;  %v233_v56 = vld [vmem:[#allocation2 + $0x1c8] sm:$0xff]  ;;  %739 = vmatpush3.bf16.msra.mxu0 %v738_v45  ;;  %v774_v58 = vpack.c.bf16 %v215_v53, %v214_v52  ;;  %v184_v60 = vld [vmem:[#allocation2 + $0x40] sm:$0xff]  ;;  %v202_v62 = vld [vmem:[#allocation2 + $0xd0] sm:$0xff] }
  0x21   :  { %769 = vmatprep.subr.bf16.mxu1 %v768_v37  ;;  %741 = vmatprep.subr.bf16.mxu0 %v740_v47  ;;  %v185_v61 = vld [vmem:[#allocation2 + $0x48] sm:$0xff]  ;;  %v776_v63 = vpack.c.bf16 %v233_v56, %v232_v55  ;;  %v203_v3 = vld [vmem:[#allocation2 + $0xd8] sm:$0xff]  ;;  %v216_v4 = vld [vmem:[#allocation2 + $0x140] sm:$0xff] }
  0x22   :  { %v217_v5 = vld [vmem:[#allocation2 + $0x148] sm:$0xff]  ;;  %v234_v6 = vld [vmem:[#allocation2 + $0x1d0] sm:$0xff]  ;;  %v235_v7 = vld [vmem:[#allocation2 + $0x1d8] sm:$0xff]  ;;  %v746_v8 = vpack.c.bf16 %v185_v61, %v184_v60  ;;  %v748_v10 = vpack.c.bf16 %v203_v3, %v202_v62 }
  0x23   :  { %856 = vset.pattern.permute.xlu1 %v925_v1  ;;  %860 = vset.pattern.permute.xlu0 %v925_v1  ;;  %v1000_v9 = vld [vmem:[%s1086_s0 + $0x18] sm:$0xff]  ;;  %v778_v11 = vpack.c.bf16 %v217_v5, %v216_v4  ;;  %v186_v12 = vld [vmem:[#allocation2 + $0x50] sm:$0xff]  ;;  %v204_v14 = vld [vmem:[#allocation2 + $0xe0] sm:$0xff]  ;;  %v780_v17 = vpack.c.bf16 %v235_v7, %v234_v6  ;;  %s931_s0 = smov [#allocation5]  }
  0x24   :  { %36 = vperm.xlu1 %856, %v978_v28   ;;  %39 = vperm.xlu0 %860, %v987_v44   ;;  %v187_v13 = vld [vmem:[#allocation2 + $0x58] sm:$0xff]  ;;  %v205_v18 = vld [vmem:[#allocation2 + $0xe8] sm:$0xff]  ;;  %v218_v19 = vld [vmem:[#allocation2 + $0x150] sm:$0xff]  ;;  %s536_s30 = sshll.u32 %s931_s0, 4  ;;  %s537_s30 = int_to_ptr.vmem [resolvable:$true] %s536_s30 }
  0x25   :  { %771 = vmatpush3.bf16.msra.mxu1 %v770_v46  ;;  %743 = vmatpush3.bf16.msra.mxu0 %v742_v57  ;;  %v219_v20 = vld [vmem:[#allocation2 + $0x158] sm:$0xff]  ;;  %v236_v21 = vld [vmem:[#allocation2 + $0x1e0] sm:$0xff]  ;;  %v237_v22 = vld [vmem:[#allocation2 + $0x1e8] sm:$0xff]  ;;  %v750_v23 = vpack.c.bf16 %v187_v13, %v186_v12  ;;  %v752_v24 = vpack.c.bf16 %v205_v18, %v204_v14  ;;  %s895_s3 = scalar_lea.vmem %s537_s30, 512  ;;  %p900_p9 = scmp.lt.s32.totalorder %s537_s30, %s537_s30 }
  0x26   :  { %773 = vmatprep.subr.bf16.mxu1 %v772_v50  ;;  %745 = vmatprep.subr.bf16.mxu0 %v744_v59  ;;  %v782_v25 = vpack.c.bf16 %v219_v20, %v218_v19  ;;  %v188_v27 = vld [vmem:[#allocation2 + $0x60] sm:$0xff]  ;;  %v206_v29 = vld [vmem:[#allocation2 + $0xf0] sm:$0xff]  ;;  %v784_v30 = vpack.c.bf16 %v237_v22, %v236_v21  ;;  %v207_v31 = vld [vmem:[#allocation2 + $0xf8] sm:$0xff]  ;;  %p896_p8 = scmp.ne.s32.totalorder %s537_s30, %s895_s3  ;;  %p901_p10 = scmp.lt.s32.totalorder %s895_s3, %s895_s3 }
  0x27   :  { %v220_v32 = vld [vmem:[#allocation2 + $0x160] sm:$0xff]  ;;  %v221_v33 = vld [vmem:[#allocation2 + $0x168] sm:$0xff]  ;;  %v238_v34 = vld [vmem:[#allocation2 + $0x1f0] sm:$0xff]  ;;  %v756_v37 = vpack.c.bf16 %v207_v31, %v206_v29 }
  0x28   :  { %858 = vset.pattern.permute.xlu1 %v924_v0  ;;  %861 = vset.pattern.permute.xlu0 %v927_v16  ;;  %v239_v35 = vld [vmem:[#allocation2 + $0x1f8] sm:$0xff]  ;;  %v190_v38 = vld [vmem:[#allocation2 + $0x70] sm:$0xff]  ;;  %v786_v40 = vpack.c.bf16 %v221_v33, %v220_v32  ;;  %v256_v46 = vld [vmem:[#allocation2 + $0x280] sm:$0xff]  ;;  %p902_p11 = por %p901_p10, %p900_p9 }
  0x29   :  { %63 = vperm.xlu1 %858, %v987_v44   ;;  %108 = vperm.xlu0 %861, %v978_v28   ;;  %v191_v39 = vld [vmem:[#allocation2 + $0x78] sm:$0xff]  ;;  %v788_v42 = vpack.c.bf16 %v239_v35, %v238_v34  ;;  %v222_v43 = vld [vmem:[#allocation2 + $0x170] sm:$0xff]  ;;  %v257_v47 = vld [vmem:[#allocation2 + $0x288] sm:$0xff] }
  0x2a   :  { %775 = vmatpush3.bf16.msra.mxu1 %v774_v58  ;;  %747 = vmatpush3.bf16.msra.mxu0 %v746_v8  ;;  %v223_v45 = vld [vmem:[#allocation2 + $0x178] sm:$0xff]  ;;  %v758_v48 = vpack.c.bf16 %v191_v39, %v190_v38  ;;  %v792_v50 = vpack.c.bf16 %v257_v47, %v256_v46  ;;  %v241_v51 = vld [vmem:[#allocation2 + $0x208] sm:$0xff]  ;;  %v258_v54 = vld [vmem:[#allocation2 + $0x290] sm:$0xff]  ;;  %p903_p12 = pnand %p902_p11, %p896_p8 }
  0x2b   :  { %777 = vmatprep.subr.bf16.mxu1 %v776_v63  ;;  %749 = vmatprep.subr.bf16.mxu0 %v748_v10  ;;  %v790_v49 = vpack.c.bf16 %v223_v45, %v222_v43  ;;  %v242_v56 = vld [vmem:[#allocation2 + $0x210] sm:$0xff]  ;;  %v243_v57 = vld [vmem:[#allocation2 + $0x218] sm:$0xff]  ;;  %v260_v58 = vld [vmem:[#allocation2 + $0x2a0] sm:$0xff] }
  0x2c   :  { %v261_v59 = vld [vmem:[#allocation2 + $0x2a8] sm:$0xff]  ;;  %v798_v62 = vpack.c.bf16 %v243_v57, %v242_v56  ;;  %v244_v3 = vld [vmem:[#allocation2 + $0x220] sm:$0xff]  ;;  %v262_v5 = vld [vmem:[#allocation2 + $0x2b0] sm:$0xff] }
  0x2d   :  { %859 = vset.pattern.permute.xlu1 %v927_v16  ;;  %114 = vperm.xlu0 %861, %v1000_v9   ;;  %v189_v16 = vld [vmem:[#allocation2 + $0x68] sm:$0xff]  ;;  %v800_v63 = vpack.c.bf16 %v261_v59, %v260_v58  ;;  %v263_v6 = vld [vmem:[#allocation2 + $0x2b8] sm:$0xff]  ;;  %v264_v13 = vld [vmem:[#allocation2 + $0x2c0] sm:$0xff] }
  0x2e   :  { %111 = vperm.xlu1 %859, %v987_v44   ;;  %779 = vmatpush3.bf16.msra.mxu1 %v778_v11  ;;  %v754_v36 = vpack.c.bf16 %v189_v16, %v188_v27  ;;  %v245_v4 = vld [vmem:[#allocation2 + $0x228] sm:$0xff]  ;;  %v804_v10 = vpack.c.bf16 %v263_v6, %v262_v5  ;;  %v246_v11 = vld [vmem:[#allocation2 + $0x230] sm:$0xff]  ;;  %v247_v12 = vld [vmem:[#allocation2 + $0x238] sm:$0xff] }
  0x2f   :  { %781 = vmatprep.subr.bf16.mxu1 %v780_v17  ;;  %751 = vmatpush3.bf16.msra.mxu0 %v750_v23  ;;  %v265_v14 = vld [vmem:[#allocation2 + $0x2c8] sm:$0xff]  ;;  %v806_v17 = vpack.c.bf16 %v247_v12, %v246_v11  ;;  %v248_v20 = vld [vmem:[#allocation2 + $0x240] sm:$0xff]  ;;  %v266_v23 = vld [vmem:[#allocation2 + $0x2d0] sm:$0xff] }
  0x30   :  { %753 = vmatprep.subr.bf16.mxu0 %v752_v24  ;;  %v249_v21 = vld [vmem:[#allocation2 + $0x248] sm:$0xff]  ;;  %v808_v22 = vpack.c.bf16 %v265_v14, %v264_v13  ;;  %v267_v24 = vld [vmem:[#allocation2 + $0x2d8] sm:$0xff]  ;;  %v250_v27 = vld [vmem:[#allocation2 + $0x250] sm:$0xff] }
  0x31   :  { %866 = vset.pattern.permute.xlu0 %v928_v26  ;;  %v251_v16 = vld [vmem:[#allocation2 + $0x258] sm:$0xff]  ;;  %v268_v31 = vld [vmem:[#allocation2 + $0x2e0] sm:$0xff]  ;;  %v269_v32 = vld [vmem:[#allocation2 + $0x2e8] sm:$0xff] }
  0x32   :  { %862 = vset.pattern.permute.xlu1 %v926_v15  ;;  %153 = vperm.xlu0 %866, %v967_v2   ;;  %v814_v33 = vpack.c.bf16 %v251_v16, %v250_v27  ;;  %v816_v34 = vpack.c.bf16 %v269_v32, %v268_v31  ;;  %v252_v35 = vld [vmem:[#allocation2 + $0x260] sm:$0xff]  ;;  %v271_v38 = vld [vmem:[#allocation2 + $0x2f8] sm:$0xff]  ;;  %v254_v43 = vld [vmem:[#allocation2 + $0x270] sm:$0xff] }
  0x33   :  { %87 = vperm.xlu1 %862, %v987_v44   ;;  %783 = vmatpush3.bf16.msra.mxu1 %v782_v25  ;;  %v810_v25 = vpack.c.bf16 %v249_v21, %v248_v20  ;;  %v255_v45 = vld [vmem:[#allocation2 + $0x278] sm:$0xff] }
  0x34   :  { %785 = vmatprep.subr.bf16.mxu1 %v784_v30  ;;  %755 = vmatpush3.bf16.msra.mxu0 %v754_v36  ;;  %v253_v36 = vld [vmem:[#allocation2 + $0x268] sm:$0xff]  ;;  %v822_v47 = vpack.c.bf16 %v255_v45, %v254_v43 }
  0x35   :  { %757 = vmatprep.subr.bf16.mxu0 %v756_v37  ;;  %v270_v37 = vld [vmem:[#allocation2 + $0x2f0] sm:$0xff] }
  0x36   :  { %869 = vset.pattern.permute.xlu0 %v929_v41 }
  0x37   :  { %863 = vset.pattern.permute.xlu1 %v924_v0  ;;  %135 = vperm.xlu0 %869, %v987_v44   ;;  %v30_v0 = vlaneseq }
  0x38   :  { %66 = vperm.xlu1 %863, %v1000_v9   ;;  %787 = vmatpush3.bf16.msra.mxu1 %v786_v40  ;;  %v818_v40 = vpack.c.bf16 %v253_v36, %v252_v35 }
  0x39   :  { %789 = vmatprep.subr.bf16.mxu1 %v788_v42  ;;  %759 = vmatpush3.bf16.msra.mxu0 %v758_v48  ;;  %v820_v42 = vpack.c.bf16 %v271_v38, %v270_v37 }
  0x3a   :  { %793 = vmatprep.subr.bf16.mxu0 %v792_v50 }
  0x3b   :  { %132 = vperm.xlu0 %869, %v978_v28  }
  0x3c   :  { %864 = vset.pattern.permute.xlu1 %v925_v1  ;;  %791 = vmatpush3.bf16.msra.mxu1 %v790_v49  ;;  %v1021_v1 = vand.u32 127, %v30_v0 }
  0x3d   :  { %42 = vperm.xlu1 %864, %v1000_v9   ;;  %824 = vmatprep.subr.bf16.mxu1 %v792_v50 }
  0x3f   :  { %872 = vset.pattern.permute.xlu0 %v928_v26 }
  0x41   :  { %865 = vset.pattern.permute.xlu1 %v926_v15  ;;  %v240_v15 = vld [vmem:[#allocation2 + $0x200] sm:$0xff] }
  0x42   :  { %90 = vperm.xlu1 %865, %v1000_v9  }
  0x46   :  { %867 = vset.pattern.permute.xlu1 %v928_v26 }
  0x47   :  { %159 = vperm.xlu1 %867, %v987_v44   ;;  %v259_v44 = vld [vmem:[#allocation2 + $0x298] sm:$0xff] }
  0x48   :  { %v796_v55 = vpack.c.bf16 %v259_v44, %v258_v54 }
  0x4b   :  { %868 = vset.pattern.permute.xlu1 %v929_v41 }
  0x4c   :  { %129 = vperm.xlu1 %868, %v967_v2   ;;  %v930_v2 = vmov 1.0  }
  0x50   :  { %870 = vset.pattern.permute.xlu1 %v928_v26  ;;  %v812_v26 = vpack.c.bf16 %v267_v24, %v266_v23 }
  0x51   :  { %156 = vperm.xlu1 %870, %v978_v28   ;;  %v794_v28 = vpack.c.bf16 %v241_v51, %v240_v15 }
  0x55   :  { %162 = vperm.xlu1 %870, %v1000_v9  }
  0x59   :  { %871 = vset.pattern.permute.xlu1 %v929_v41 }
  0x5a   :  { %138 = vperm.xlu1 %871, %v1000_v9   ;;  %v802_v9 = vpack.c.bf16 %v245_v4, %v244_v3 }
  0x94   :  { %v34_v52 = vpop.permute.xlu1 %33  ;;  %v58_v53 = vpop.permute.xlu0 %57 }
  0x95   :  { %vm44_vm0 = vcmp.eq.s32.totalorder %v1021_v1, %v34_v52  ;;  %vm68_vm1 = vcmp.eq.s32.totalorder %v1021_v1, %v58_v53 }
  0x96   :  { %572 = vmatprep.mubr.msk.f32.mxu0 %vm68_vm1, %v930_v2 }
  0x97   :  { %573 = vmatmul.mubr.msk.f32.vlgmr.msra.gmra.mrb[0].mxu0 %vm44_vm0, %v930_v2 }
  0x98   :  { %795 = vmatpush3.bf16.msra.mxu0 %v794_v28 }
  0x99   :  { %v82_v60 = vpop.permute.xlu1 %81  ;;  %v106_v61 = vpop.permute.xlu0 %105  ;;  %797 = vmatprep.subr.bf16.mxu0 %v796_v55 }
  0x9a   :  { %vm92_vm2 = vcmp.eq.s32.totalorder %v1021_v1, %v82_v60  ;;  %vm116_vm3 = vcmp.eq.s32.totalorder %v1021_v1, %v106_v61 }
  0x9b   :  { %580 = vmatprep.mubr.msk.f32.mxu1 %vm116_vm3, %v930_v2 }
  0x9c   :  { %581 = vmatmul.mubr.msk.f32.vlgmr.msra.gmra.mrb[0].mxu1 %vm92_vm2, %v930_v2  ;;  %799 = vmatpush3.bf16.msra.mxu0 %v798_v62 }
  0x9d   :  { %832 = vmatpush3.bf16.msra.mxu1 %v794_v28  ;;  %801 = vmatprep.subr.bf16.mxu0 %v800_v63 }
  0x9e   :  { %v61_v7 = vpop.permute.xlu1 %60  ;;  %v85_v8 = vpop.permute.xlu0 %84  ;;  %825 = vmatprep.subr.bf16.mxu1 %v796_v55 }
  0x9f   :  { %vm69_vm4 = vcmp.eq.s32.totalorder %v1021_v1, %v61_v7  ;;  %vm93_vm6 = vcmp.eq.s32.totalorder %v1021_v1, %v85_v8 }
  0xa0   :  { %574 = vmatprep.mubr.msk.f32.mxu0 %vm69_vm4, %v930_v2  ;;  %803 = vmatpush3.bf16.msra.mxu0 %v802_v9 }
  0xa1   :  { %833 = vmatpush3.bf16.msra.mxu1 %v798_v62  ;;  %805 = vmatprep.subr.bf16.mxu0 %v804_v10 }
  0xa2   :  { %826 = vmatprep.subr.bf16.mxu1 %v800_v63 }
  0xa3   :  { %v37_v18 = vpop.permute.xlu1 %36  ;;  %v40_v19 = vpop.permute.xlu0 %39 }
  0xa4   :  { %vm45_vm5 = vcmp.eq.s32.totalorder %v1021_v1, %v37_v18  ;;  %807 = vmatpush3.bf16.msra.mxu0 %v806_v17  ;;  %vm46_vm7 = vcmp.eq.s32.totalorder %v1021_v1, %v40_v19 }
  0xa5   :  { %575 = vmatmul.mubr.msk.f32.gmra.mrb[2].mxu0 %vm45_vm5, %v930_v2  ;;  %834 = vmatpush3.bf16.msra.mxu1 %v802_v9 }
  0xa6   :  { %827 = vmatprep.subr.bf16.mxu1 %v804_v10  ;;  %809 = vmatprep.subr.bf16.mxu0 %v808_v22 }
  0xa8   :  { %v64_v29 = vpop.permute.xlu1 %63  ;;  %v109_v30 = vpop.permute.xlu0 %108  ;;  %811 = vmatpush3.bf16.msra.mxu0 %v810_v25 }
  0xa9   :  { %vm70_vm8 = vcmp.eq.s32.totalorder %v1021_v1, %v64_v29  ;;  %vm117_vm9 = vcmp.eq.s32.totalorder %v1021_v1, %v109_v30  ;;  %835 = vmatpush3.bf16.msra.mxu1 %v806_v17  ;;  %813 = vmatprep.subr.bf16.mxu0 %v812_v26 }
  0xaa   :  { %576 = vmatprep.mubr.msk.f32.mxu0 %vm70_vm8, %v930_v2  ;;  %582 = vmatprep.mubr.msk.f32.mxu1 %vm117_vm9, %v930_v2 }
  0xab   :  { %583 = vmatmul.mubr.msk.f32.gmra.mrb[2].mxu1 %vm93_vm6, %v930_v2  ;;  %577 = vmatmul.mubr.msk.f32.gmra.mrb[4].mxu0 %vm46_vm7, %v930_v2 }
  0xac   :  { %828 = vmatprep.subr.bf16.mxu1 %v808_v22  ;;  %815 = vmatpush3.bf16.msra.mxu0 %v814_v33  ;;  %v115_v41 = vpop.permute.xlu0 %114 }
  0xad   :  { %v112_v39 = vpop.permute.xlu1 %111  ;;  %836 = vmatpush3.bf16.msra.mxu1 %v810_v25  ;;  %817 = vmatprep.subr.bf16.mxu0 %v816_v34  ;;  %vm119_vm11 = vcmp.eq.s32.totalorder %v1021_v1, %v115_v41 }
  0xae   :  { %vm118_vm10 = vcmp.eq.s32.totalorder %v1021_v1, %v112_v39  ;;  %829 = vmatprep.subr.bf16.mxu1 %v812_v26 }
  0xaf   :  { %584 = vmatprep.mubr.msk.f32.mxu1 %vm118_vm10, %v930_v2 }
  0xb0   :  { %819 = vmatpush3.bf16.msra.mxu0 %v818_v40 }
  0xb1   :  { %837 = vmatpush3.bf16.msra.mxu1 %v814_v33  ;;  %821 = vmatprep.subr.bf16.mxu0 %v820_v42  ;;  %v154_v49 = vpop.permute.xlu0 %153 }
  0xb2   :  { %v88_v46 = vpop.permute.xlu1 %87  ;;  %830 = vmatprep.subr.bf16.mxu1 %v816_v34  ;;  %vm164_vm14 = vcmp.eq.s32.totalorder %v1021_v1, %v154_v49 }
  0xb3   :  { %vm94_vm12 = vcmp.eq.s32.totalorder %v1021_v1, %v88_v46 }
  0xb4   :  { %585 = vmatmul.mubr.msk.f32.gmra.mrb[4].mxu1 %vm94_vm12, %v930_v2  ;;  %823 = vmatpush3.bf16.msra.mxu0 %v822_v47 }
  0xb5   :  { %586 = vmatprep.mubr.msk.f32.mxu1 %vm119_vm11, %v930_v2  ;;  %838 = vmatpush3.bf16.msra.mxu1 %v818_v40 }
  0xb6   :  { %831 = vmatprep.subr.bf16.mxu1 %v820_v42  ;;  %v136_v15 = vpop.permute.xlu0 %135 }
  0xb7   :  { %v67_v48 = vpop.permute.xlu1 %66  ;;  %vm142_vm1 = vcmp.eq.s32.totalorder %v1021_v1, %v136_v15 }
  0xb8   :  { %vm71_vm13 = vcmp.eq.s32.totalorder %v1021_v1, %v67_v48 }
  0xb9   :  { %578 = vmatprep.mubr.msk.f32.mxu0 %vm71_vm13, %v930_v2  ;;  %839 = vmatpush3.bf16.msra.mxu1 %v822_v47 }
  0xba   :  { %v133_v53 = vpop.permute.xlu0 %132 }
  0xbb   :  { %vm141_vm4 = vcmp.eq.s32.totalorder %v1021_v1, %v133_v53 }
  0xbc   :  { %v43_v50 = vpop.permute.xlu1 %42 }
  0xbd   :  { %vm47_vm15 = vcmp.eq.s32.totalorder %v1021_v1, %v43_v50 }
  0xbe   :  { %579 = vmatmul.mubr.msk.f32.gmra.mrb[6].mxu0 %vm47_vm15, %v930_v2 }
  0xbf   :  { %588 = vmatprep.mubr.msk.f32.mxu0 %vm164_vm14, %v930_v2 }
  0xc1   :  { %v91_v0 = vpop.permute.xlu1 %90 }
  0xc2   :  { %vm95_vm0 = vcmp.eq.s32.totalorder %v1021_v1, %v91_v0 }
  0xc3   :  { %587 = vmatmul.mubr.msk.f32.gmra.mrb[6].mxu1 %vm95_vm0, %v930_v2 }
  0xc6   :  { %v160_v51 = vpop.permute.xlu1 %159 }
  0xc7   :  { %vm166_vm2 = vcmp.eq.s32.totalorder %v1021_v1, %v160_v51 }
  0xc8   :  { %592 = vmatprep.mubr.msk.f32.mxu1 %vm166_vm2, %v930_v2 }
  0xc9   :  { %593 = vmatmul.mubr.msk.f32.vlgmr.msra.gmra.mrb[8].mxu1 %vm142_vm1, %v930_v2 }
  0xcb   :  { %v130_v52 = vpop.permute.xlu1 %129 }
  0xcc   :  { %vm140_vm3 = vcmp.eq.s32.totalorder %v1021_v1, %v130_v52 }
  0xcd   :  { %589 = vmatmul.mubr.msk.f32.vlgmr.msra.gmra.mrb[8].mxu0 %vm140_vm3, %v930_v2 }
  0xd0   :  { %v157_v54 = vpop.permute.xlu1 %156 }
  0xd1   :  { %vm165_vm5 = vcmp.eq.s32.totalorder %v1021_v1, %v157_v54 }
  0xd2   :  { %590 = vmatprep.mubr.msk.f32.mxu0 %vm165_vm5, %v930_v2 }
  0xd3   :  { %591 = vmatmul.mubr.msk.f32.gmra.mrb[10].mxu0 %vm141_vm4, %v930_v2 }
  0xd4   :  { %v163_v44 = vpop.permute.xlu1 %162 }
  0xd5   :  { %vm167_vm6 = vcmp.eq.s32.totalorder %v1021_v1, %v163_v44 }
  0xd6   :  { %594 = vmatprep.mubr.msk.f32.mxu1 %vm167_vm6, %v930_v2 }
  0xd9   :  { %v139_v28 = vpop.permute.xlu1 %138 }
  0xda   :  { %vm143_vm7 = vcmp.eq.s32.totalorder %v1021_v1, %v139_v28 }
  0xdb   :  { %595 = vmatmul.mubr.msk.f32.gmra.mrb[10].mxu1 %vm143_vm7, %v930_v2 }
 0x16a   :  { %v628_v55 = vpop.f32.mrb[0].mxu0 }
 0x16b   :  { %v629_v56 = vpop.f32.mrb[1].mxu0 }
 0x16c   :  { %v630_v57 = vadd.f32 %v629_v56, %v628_v55 }
 0x16f   :  { %v672_v58 = vpop.f32.mrb[0].mxu1 }
 0x170   :  { %v673_v59 = vpop.f32.mrb[1].mxu1 }
 0x171   :  { %v674_v60 = vadd.f32 %v673_v59, %v672_v58 }
 0x173   :  { %v424_v61 = vadd.f32 %v674_v60, %v630_v57 }
 0x178   :  { %v631_v62 = vpop.f32.mrb[2].mxu0 }
 0x179   :  { %v632_v63 = vpop.f32.mrb[3].mxu0 }
 0x17a   :  { %v633_v3 = vadd.f32 %v632_v63, %v631_v62 }
 0x17e   :  { %v675_v4 = vpop.f32.mrb[2].mxu1  ;;  %v634_v5 = vpop.f32.mrb[4].mxu0 }
 0x17f   :  { %v676_v6 = vpop.f32.mrb[3].mxu1  ;;  %v635_v7 = vpop.f32.mrb[5].mxu0 }
 0x180   :  { %v677_v8 = vadd.f32 %v676_v6, %v675_v4  ;;  %v636_v9 = vadd.f32 %v635_v7, %v634_v5 }
 0x182   :  { %v429_v10 = vadd.f32 %v677_v8, %v633_v3 }
 0x187   :  { %v678_v1 = vpop.f32.mrb[4].mxu1 }
 0x188   :  { %v679_v11 = vpop.f32.mrb[5].mxu1 }
 0x189   :  { %v680_v2 = vadd.f32 %v679_v11, %v678_v1 }
 0x18b   :  { %v434_v12 = vadd.f32 %v680_v2, %v636_v9 }
 0x191   :  { %v637_v13 = vpop.f32.mrb[6].mxu0 }
 0x192   :  { %v638_v14 = vpop.f32.mrb[7].mxu0 }
 0x193   :  { %v639_v17 = vadd.f32 %v638_v14, %v637_v13 }
 0x196   :  { %v681_v18 = vpop.f32.mrb[6].mxu1 }
 0x197   :  { %v682_v19 = vpop.f32.mrb[7].mxu1 }
 0x198   :  { %v683_v20 = vadd.f32 %v682_v19, %v681_v18 }
 0x19a   :  { %v439_v21 = vadd.f32 %v683_v20, %v639_v17 }
 0x19c   :  { %v722_v22 = vpop.f32.mrb[8].mxu1 }
 0x19d   :  { %v723_v23 = vpop.f32.mrb[9].mxu1 }
 0x19e   :  { %v724_v24 = vadd.f32 %v723_v23, %v722_v22 }
 0x1a0   :  { %v519_v25 = vadd.f32 %v724_v24, %v434_v12  ;;  %v716_v26 = vpop.f32.mrb[8].mxu0 }
 0x1a1   :  { %v717_v27 = vpop.f32.mrb[9].mxu0 }
 0x1a2   :  { %529 = vst [vmem:[#allocation5 + $0x10] sm:$0xff] %v519_v25  ;;  %v718_v16 = vadd.f32 %v717_v27, %v716_v26 }
 0x1a4   :  { %v509_v29 = vadd.f32 %v718_v16, %v424_v61 }
 0x1a6   :  { %527 = vst [vmem:[#allocation5] sm:$0xff] %v509_v29  ;;  %v719_v30 = vpop.f32.mrb[10].mxu0 }
 0x1a7   :  { %v720_v31 = vpop.f32.mrb[11].mxu0 }
 0x1a8   :  { %v721_v32 = vadd.f32 %v720_v31, %v719_v30 }
 0x1aa   :  { %v514_v33 = vadd.f32 %v721_v32, %v429_v10 }
 0x1ac   :  { %528 = vst [vmem:[#allocation5 + $0x8] sm:$0xff] %v514_v33 }
 0x1ae   :  { %v725_v34 = vpop.f32.mrb[10].mxu1 }
 0x1af   :  { %v726_v35 = vpop.f32.mrb[11].mxu1 }
 0x1b0   :  { %v727_v36 = vadd.f32 %v726_v35, %v725_v34 }
 0x1b2   :  { %v524_v37 = vadd.f32 %v727_v36, %v439_v21 }
 0x1b4   :  { %530 = vst [vmem:[#allocation5 + $0x18] sm:$0xff] %v524_v37 }
 0x1b5   :  { %906 = shalt.err (!%p903_p12)
}
 0x1b6   :  { %s907_s6 = scalar_lea.hbm %s1088_s2, 512 }
 0x1b7   :  { %p908_p13 = scmp.ne.s32.totalorder %s1088_s2, %s907_s6  ;;  %p911_p0 = scmp.lt.u32.totalorder %s907_s6, %s1088_s2 }
 0x1b9   :  { %p913_p1 = pnand %p911_p0, %p908_p13 }
 0x1bb   :  { %916 = shalt.err (!%p913_p1)
}
 0x1bc   :  { %542 = dma.vmem_to_hbm [thread:$0]  %s537_s30, 512, %s1088_s2, [#allocation4], %s922_s19, %s922_s19, %s923_s20  }
 0x1bd   :  { %919 = dma.done.wait [#allocation4], 512  }
 0x1be   :  { %920 = vsyncadd [#allocation4], 4294966784 }
 0x1bf   :  { %546 = vsyncpa [#allocation3], 1 }
 0x1c0   :  { %547 = vsyncpa [#allocation4], 1 }

</bundles_post_ra>
